<compile_context>
chip_gen: v7x
topology: tpu7x:2x2x1
jax: 0.10.0
libtpu: 0.0.40
codegen_flags: <defaults>
</compile_context>

<pallas_src>
import jax
import jax.numpy as jnp
from jax.experimental import pallas as pl
from jax.experimental.pallas import tpu as pltpu

IN_DIM_DEFAULT = 4      # len(args['support_features'])
HIDDEN_DIM = 100        # module's hidden width
HIDDEN_PAD = 128        # lane-aligned padded hidden width
OUT_DIM = 768


def feat_encoder_kernel(x_ref, w1_ref, b1_ref, w2_ref, b2_ref, w3_ref, bt_ref, o_ref):
    # One (batch tile, output-column block) per grid step; all three matmuls and
    # ReLUs fused on-chip.  Layer 1 is f32; layers 2/3 use bf16 weights with f32
    # accumulation; the final bias already includes type_enc.
    x = x_ref[...]                                                  # f32 (tm, in_dim)

    h1 = jnp.dot(x, w1_ref[...], preferred_element_type=jnp.float32) + b1_ref[...]
    h1 = jnp.maximum(h1, 0.0).astype(jnp.bfloat16)

    h2 = jnp.dot(h1, w2_ref[...], preferred_element_type=jnp.float32) + b2_ref[...]
    h2 = jnp.maximum(h2, 0.0).astype(jnp.bfloat16)

    out = jnp.dot(h2, w3_ref[...], preferred_element_type=jnp.float32) + bt_ref[...]
    o_ref[...] = out.astype(o_ref.dtype)


def prepare_kernel_params(p):
    """Module-shaped f32 params -> padded / fused / mixed-precision kernel params."""
    in_dim = p["w1"].shape[0]
    w1p = jnp.zeros((in_dim, HIDDEN_PAD), jnp.float32).at[:, :HIDDEN_DIM].set(p["w1"])
    b1p = jnp.zeros((1, HIDDEN_PAD), jnp.float32).at[:, :HIDDEN_DIM].set(p["b1"])
    w2p = (jnp.zeros((HIDDEN_PAD, HIDDEN_PAD), jnp.float32)
           .at[:HIDDEN_DIM, :HIDDEN_DIM].set(p["w2"])).astype(jnp.bfloat16)
    b2p = jnp.zeros((1, HIDDEN_PAD), jnp.float32).at[:, :HIDDEN_DIM].set(p["b2"])
    w3p = (jnp.zeros((HIDDEN_PAD, OUT_DIM), jnp.float32)
           .at[:HIDDEN_DIM, :].set(p["w3"])).astype(jnp.bfloat16)
    b3t = (p["b3"] + p["type_enc"]).astype(jnp.float32)        # fused bias + type_enc
    return {"w1": w1p, "b1": b1p, "w2": w2p, "b2": b2p, "w3": w3p, "b3t": b3t}


def feat_encoder_forward(x, kparams, *, tm_max=1024, out_dtype=jnp.float32):
    """x: (B, in_dim) f32, kparams from prepare_kernel_params -> (B, 1, OUT_DIM)."""
    B, in_dim = x.shape

    # Batch tile: multiple of 8 sublanes, capped at tm_max; no input padding --
    # a partial final block (B % tm != 0) is handled by Pallas directly.
    tm = min(tm_max, max(8, pl.cdiv(B, 8) * 8))
    batch_steps = pl.cdiv(B, tm)

    # v7x: if the batch axis alone would give a single grid step, split OUT_DIM
    # into 2 column blocks so both TensorCores have a "parallel" step to take.
    n_col = 2 if batch_steps < 2 else 1
    tn = OUT_DIM // n_col                                   # 384 or 768 (128-aligned)
    grid = (batch_steps, n_col)

    out_bytes = jnp.dtype(out_dtype).itemsize
    flops = 2 * B * (n_col * (in_dim * HIDDEN_PAD + HIDDEN_PAD * HIDDEN_PAD)
                     + HIDDEN_PAD * OUT_DIM)
    bytes_accessed = (B * in_dim * 4                         # x
                      + in_dim * HIDDEN_PAD * 4              # w1 (f32)
                      + HIDDEN_PAD * 4                       # b1
                      + HIDDEN_PAD * HIDDEN_PAD * 2          # w2 (bf16)
                      + HIDDEN_PAD * 4                       # b2
                      + HIDDEN_PAD * OUT_DIM * 2             # w3 (bf16)
                      + OUT_DIM * 4                          # b3 + type_enc
                      + B * OUT_DIM * out_bytes)             # out (dominant)

    out2d = pl.pallas_call(
        feat_encoder_kernel,
        out_shape=jax.ShapeDtypeStruct((B, OUT_DIM), out_dtype),
        grid=grid,
        in_specs=[
            pl.BlockSpec((tm, in_dim), lambda i, j: (i, 0)),               # x tile
            pl.BlockSpec((in_dim, HIDDEN_PAD), lambda i, j: (0, 0)),       # w1 (resident)
            pl.BlockSpec((1, HIDDEN_PAD), lambda i, j: (0, 0)),            # b1
            pl.BlockSpec((HIDDEN_PAD, HIDDEN_PAD), lambda i, j: (0, 0)),   # w2
            pl.BlockSpec((1, HIDDEN_PAD), lambda i, j: (0, 0)),            # b2
            pl.BlockSpec((HIDDEN_PAD, tn), lambda i, j: (0, j)),           # w3 col block
            pl.BlockSpec((1, tn), lambda i, j: (0, j)),                    # b3 + type_enc
        ],
        out_specs=pl.BlockSpec((tm, tn), lambda i, j: (i, j)),
        # ~8 MiB working set at tm=1024 -> default scoped VMEM is enough on
        # v5e (16 MiB) and v6e/v7x (32 MiB); no vmem_limit_bytes override needed.
        compiler_params=pltpu.CompilerParams(
            dimension_semantics=("parallel", "parallel")),
        cost_estimate=pl.CostEstimate(flops=flops, transcendentals=0,
                                      bytes_accessed=bytes_accessed),
    )(x, kparams["w1"], kparams["b1"], kparams["w2"], kparams["b2"],
      kparams["w3"], kparams["b3t"])

    return out2d[:, None, :]                 # unsqueeze(1) -- free reshape, no copy


def init_params(key, in_dim=IN_DIM_DEFAULT):
    """Deterministic synthetic parameters matching the module's shapes (f32)."""
    ks = jax.random.split(key, 7)
    scale = 0.05
    return {
        "w1": scale * jax.random.normal(ks[0], (in_dim, HIDDEN_DIM), jnp.float32),
        "b1": scale * jax.random.normal(ks[1], (1, HIDDEN_DIM), jnp.float32),
        "w2": scale * jax.random.normal(ks[2], (HIDDEN_DIM, HIDDEN_DIM), jnp.float32),
        "b2": scale * jax.random.normal(ks[3], (1, HIDDEN_DIM), jnp.float32),
        "w3": scale * jax.random.normal(ks[4], (HIDDEN_DIM, OUT_DIM), jnp.float32),
        "b3": scale * jax.random.normal(ks[5], (1, OUT_DIM), jnp.float32),
        # kaiming_normal_ on a (1, 768) tensor in the module; synthetic normal here
        "type_enc": jax.random.normal(ks[6], (1, OUT_DIM), jnp.float32)
                    * (2.0 / OUT_DIM) ** 0.5,
    }


def feat_encoder_ref(x, p):
    """Pure f32 reference matching the PyTorch module."""
    h1 = jnp.maximum(x @ p["w1"] + p["b1"], 0.0)
    h2 = jnp.maximum(h1 @ p["w2"] + p["b2"], 0.0)
    out = h2 @ p["w3"] + p["b3"] + p["type_enc"]
    return out[:, None, :]


if __name__ == "__main__":
    key = jax.random.PRNGKey(0)
    k_x, k_p = jax.random.split(key)

    B, in_dim = 8, IN_DIM_DEFAULT          # small batch, in_dim = #support_features
    x = jax.random.normal(k_x, (B, in_dim), jnp.float32)
    params = init_params(k_p, in_dim)
    kparams = prepare_kernel_params(params)   # pad/fuse/bf16-cast once

    out = feat_encoder_forward(x, kparams)    # f32 output for parity with reference
    out = jax.block_until_ready(out)

    ref = feat_encoder_ref(x, params)
    assert out.shape == (B, 1, OUT_DIM), out.shape
    # bf16 weights/activations in layers 2-3 (f32 accumulation) -> loosened tolerance
    assert jnp.allclose(out, ref, atol=2e-2, rtol=2e-2), "mismatch vs reference"

    print("KERNEL_OK")
</pallas_src>

<mosaic_0001>
module attributes {stable_mosaic.version = 11 : i64} {
  func.func @feat_encoder_kernel(%arg0: i32, %arg1: i32, %arg2: memref<8x4xf32, #tpu.memory_space<vmem>>, %arg3: memref<4x128xf32, #tpu.memory_space<vmem>>, %arg4: memref<1x128xf32, #tpu.memory_space<vmem>>, %arg5: memref<128x128xbf16, #tpu.memory_space<vmem>>, %arg6: memref<1x128xf32, #tpu.memory_space<vmem>>, %arg7: memref<128x384xbf16, #tpu.memory_space<vmem>>, %arg8: memref<1x384xf32, #tpu.memory_space<vmem>>, %arg9: memref<8x384xf32, #tpu.memory_space<vmem>>) attributes {dimension_semantics = [#tpu.dimension_semantics<parallel>, #tpu.dimension_semantics<parallel>], iteration_bounds = array<i64: 1, 2>, scalar_prefetch = 0 : i64, scratch_operands = 0 : i64, tpu.core_type = #tpu.core_type<tc>, window_params = [{transform_indices = @transform_0, window_bounds = array<i64: 8, 4>}, {pipeline_mode = #tpu.pipeline_mode<synchronous>, transform_indices = @transform_1, window_bounds = array<i64: 4, 128>}, {pipeline_mode = #tpu.pipeline_mode<synchronous>, transform_indices = @transform_2, window_bounds = array<i64: 1, 128>}, {pipeline_mode = #tpu.pipeline_mode<synchronous>, transform_indices = @transform_3, window_bounds = array<i64: 128, 128>}, {pipeline_mode = #tpu.pipeline_mode<synchronous>, transform_indices = @transform_4, window_bounds = array<i64: 1, 128>}, {transform_indices = @transform_5, window_bounds = array<i64: 128, 384>}, {transform_indices = @transform_6, window_bounds = array<i64: 1, 384>}, {transform_indices = @transform_7, window_bounds = array<i64: 8, 384>}]} {
    %c0 = arith.constant 0 : index
    %c0_0 = arith.constant 0 : index
    %0 = vector.load %arg2[%c0, %c0_0] : memref<8x4xf32, #tpu.memory_space<vmem>>, vector<8x4xf32>
    %c0_1 = arith.constant 0 : index
    %c0_2 = arith.constant 0 : index
    %1 = vector.load %arg3[%c0_1, %c0_2] : memref<4x128xf32, #tpu.memory_space<vmem>>, vector<4x128xf32>
    %cst = arith.constant dense<0.000000e+00> : vector<8x128xf32>
    %2 = tpu.matmul %0, %1, %cst {dimension_numbers = #tpu.dot_dimension_numbers<[1], [0], [0], [1], [0, 0, 1, 1], [], []>} : vector<8x4xf32>, vector<4x128xf32>, vector<8x128xf32> -> vector<8x128xf32>
    %c0_3 = arith.constant 0 : index
    %c0_4 = arith.constant 0 : index
    %3 = vector.load %arg4[%c0_3, %c0_4] : memref<1x128xf32, #tpu.memory_space<vmem>>, vector<1x128xf32>
    %4 = vector.broadcast %3 : vector<1x128xf32> to vector<8x128xf32>
    %5 = arith.addf %2, %4 : vector<8x128xf32>
    %cst_5 = arith.constant 0.000000e+00 : f32
    %6 = vector.broadcast %cst_5 : f32 to vector<8x128xf32>
    %7 = arith.maximumf %5, %6 : vector<8x128xf32>
    %8 = arith.truncf %7 : vector<8x128xf32> to vector<8x128xbf16>
    %c0_6 = arith.constant 0 : index
    %c0_7 = arith.constant 0 : index
    %9 = vector.load %arg5[%c0_6, %c0_7] : memref<128x128xbf16, #tpu.memory_space<vmem>>, vector<128x128xbf16>
    %cst_8 = arith.constant dense<0.000000e+00> : vector<8x128xf32>
    %10 = tpu.matmul %8, %9, %cst_8 {dimension_numbers = #tpu.dot_dimension_numbers<[1], [0], [0], [1], [0, 0, 1, 1], [], []>} : vector<8x128xbf16>, vector<128x128xbf16>, vector<8x128xf32> -> vector<8x128xf32>
    %c0_9 = arith.constant 0 : index
    %c0_10 = arith.constant 0 : index
    %11 = vector.load %arg6[%c0_9, %c0_10] : memref<1x128xf32, #tpu.memory_space<vmem>>, vector<1x128xf32>
    %12 = vector.broadcast %11 : vector<1x128xf32> to vector<8x128xf32>
    %13 = arith.addf %10, %12 : vector<8x128xf32>
    %cst_11 = arith.constant 0.000000e+00 : f32
    %14 = vector.broadcast %cst_11 : f32 to vector<8x128xf32>
    %15 = arith.maximumf %13, %14 : vector<8x128xf32>
    %16 = arith.truncf %15 : vector<8x128xf32> to vector<8x128xbf16>
    %c0_12 = arith.constant 0 : index
    %c0_13 = arith.constant 0 : index
    %17 = vector.load %arg7[%c0_12, %c0_13] : memref<128x384xbf16, #tpu.memory_space<vmem>>, vector<128x384xbf16>
    %cst_14 = arith.constant dense<0.000000e+00> : vector<8x384xf32>
    %18 = tpu.matmul %16, %17, %cst_14 {dimension_numbers = #tpu.dot_dimension_numbers<[1], [0], [0], [1], [0, 0, 1, 1], [], []>} : vector<8x128xbf16>, vector<128x384xbf16>, vector<8x384xf32> -> vector<8x384xf32>
    %c0_15 = arith.constant 0 : index
    %c0_16 = arith.constant 0 : index
    %19 = vector.load %arg8[%c0_15, %c0_16] : memref<1x384xf32, #tpu.memory_space<vmem>>, vector<1x384xf32>
    %20 = vector.broadcast %19 : vector<1x384xf32> to vector<8x384xf32>
    %21 = arith.addf %18, %20 : vector<8x384xf32>
    %c0_17 = arith.constant 0 : index
    %c0_18 = arith.constant 0 : index
    %22 = vector.load %arg9[%c0_17, %c0_18] : memref<8x384xf32, #tpu.memory_space<vmem>>, vector<8x384xf32>
    tpu.vector_store %arg9[%c0_17, %c0_18], %21 {strides = array<i32>} : memref<8x384xf32, #tpu.memory_space<vmem>>, vector<8x384xf32>,
    return
  }
  func.func @transform_0(%arg0: i32, %arg1: i32) -> (i32, i32) {
    %c0_i32 = arith.constant 0 : i32
    %c0_i32_0 = arith.constant 0 : i32
    return %arg0, %c0_i32 : i32, i32
  }
  func.func @transform_1(%arg0: i32, %arg1: i32) -> (i32, i32) {
    %c0_i32 = arith.constant 0 : i32
    %c0_i32_0 = arith.constant 0 : i32
    %c0_i32_1 = arith.constant 0 : i32
    return %c0_i32, %c0_i32_0 : i32, i32
  }
  func.func @transform_2(%arg0: i32, %arg1: i32) -> (i32, i32) {
    %c0_i32 = arith.constant 0 : i32
    %c0_i32_0 = arith.constant 0 : i32
    %c0_i32_1 = arith.constant 0 : i32
    return %c0_i32, %c0_i32_0 : i32, i32
  }
  func.func @transform_3(%arg0: i32, %arg1: i32) -> (i32, i32) {
    %c0_i32 = arith.constant 0 : i32
    %c0_i32_0 = arith.constant 0 : i32
    %c0_i32_1 = arith.constant 0 : i32
    return %c0_i32, %c0_i32_0 : i32, i32
  }
  func.func @transform_4(%arg0: i32, %arg1: i32) -> (i32, i32) {
    %c0_i32 = arith.constant 0 : i32
    %c0_i32_0 = arith.constant 0 : i32
    %c0_i32_1 = arith.constant 0 : i32
    return %c0_i32, %c0_i32_0 : i32, i32
  }
  func.func @transform_5(%arg0: i32, %arg1: i32) -> (i32, i32) {
    %c0_i32 = arith.constant 0 : i32
    %c0_i32_0 = arith.constant 0 : i32
    return %c0_i32, %arg1 : i32, i32
  }
  func.func @transform_6(%arg0: i32, %arg1: i32) -> (i32, i32) {
    %c0_i32 = arith.constant 0 : i32
    %c0_i32_0 = arith.constant 0 : i32
    return %c0_i32, %arg1 : i32, i32
  }
  func.func @transform_7(%arg0: i32, %arg1: i32) -> (i32, i32) {
    %c0_i32 = arith.constant 0 : i32
    return %arg0, %arg1 : i32, i32
  }
}

</mosaic_0001>

<bundles_post_ra>
// kernel: tpu_custom_call.1
= control target key start
LH: loop header
LB: loop body
LE: loop exit
PB: predicated region body
PF: predicated region fallthrough
CT: control target
= control target key end

     0   :  { %s1690_s0 = inlined_call_operand.vmem [shape: f32[8,4], index: 0, kind: input, shape index: {}]   ;;  %s1691_s1 = inlined_call_operand.vmem [shape: f32[4,128], index: 1, kind: input, shape index: {}]   ;;  %s1692_s2 = inlined_call_operand.vmem [shape: f32[1,128], index: 2, kind: input, shape index: {}]   ;;  %s1693_s3 = inlined_call_operand.hbm [shape: bf16[128,128], index: 3, kind: input, shape index: {}]   ;;  %s1694_s4 = inlined_call_operand.vmem [shape: f32[1,128], index: 4, kind: input, shape index: {}]   ;;  %s1695_s5 = inlined_call_operand.hbm [shape: bf16[128,768], index: 5, kind: input, shape index: {}]   ;;  %s1696_s6 = inlined_call_operand.vmem [shape: f32[1,768], index: 6, kind: input, shape index: {}]   ;;  %s1697_s7 = inlined_call_operand.hbm [shape: f32[8,768], index: 7, kind: output, shape index: {}]  }
   0x1   :  { %1709 = sst [smem:[#allocation14_spill]] %s1697_s7 }
   0x2   :  { %12 = vsyncpa [#allocation3], 0 }
   0x3   :  { %13 = vsyncpa [#allocation6], 0 }
   0x4   :  { %15 = vsyncpa [#allocation6 + $0x1], 0 }
   0x5   :  { %16 = vsyncpa [#allocation4], 0 }
   0x6   :  { %18 = vsyncpa [#allocation4 + $0x1], 0  ;;  %s1398_s24 = smov 0   ;;  %s1400_s25 = smov 0  }
   0x7   :  { %s1402_s26 = smov 0   ;;  %s1404_s27 = smov 0  }
   0x8   :  { %s1406_s28 = smov 0   ;;  %s1408_s29 = smov 0  }
   0x9 LB: > { %1710 = sst [smem:[#allocation11_spill]] %s1325_s24  ;;  %s962_s30 = sadd.s32 4294967295, %s1345_s29   ;;  %s1345_s29 = sphi %s1408_s29, %s24_s29   ;;  %s1341_s28 = sphi %s1406_s28, %s1739_s28   ;;  %s1337_s27 = sphi %s1404_s27, %s1738_s27   ;;  %s1333_s26 = sphi %s1402_s26, %s1737_s26   ;;  %s1329_s25 = sphi %s1400_s25, %s1736_s25   ;;  %s1325_s24 = sphi %s1398_s24, %s1735_s24  }
   0xa   : > { %1711 = sst [smem:[#allocation12_spill]] %s1345_s29  ;;  %s963_s8 = sadd.s32 4294967294, %s1345_s29  }
   0xb   : > { %p160_p0 = scmp.ne.s32.totalorder %s1333_s26, %s1329_s25  ;;  %p161_p1 = scmp.eq.s32.totalorder %s1345_s29, 0 }
   0xc   : > { %p166_p2 = scmp.ne.s32.totalorder %s1329_s25, %s1325_s24  ;;  %p1436_p3 = scmp.eq.s32.totalorder %s962_s30, 0 }
   0xd   : > { %p218_p4 = scmp.eq.s32.totalorder %s962_s30, 1  ;;  %p1440_p5 = por %p161_p1, %p160_p0 }
   0xe   : > { %s1712_s10 = scalar_select %p1436_p3, 1, 0 }
   0xf   : > { %p224_p6 = scmp.eq.s32.totalorder %s963_s8, 1  ;;  %p1446_p7 = por %p1436_p3, %p166_p2 }
  0x10   : > { %p1450_p8 = por %p218_p4, %p160_p0  ;;  %p964_p10 = scmp.ge.s32.totalorder %s1345_s29, 1 }
  0x11   : > { %s1714_s12 = scalar_select %p1446_p7, 1, 0 }
  0x12   : > { %s1715_s13 = scalar_select %p1450_p8, 1, 0 }
  0x13   : > { %p1454_p9 = por %p224_p6, %p166_p2  ;;  %p231_p11 = scmp.lt.s32.totalorder %s1345_s29, 3 }
  0x14   : > { %s1347_s16 = smov [#allocation2]   ;;  %p1101_p1 = scmp.lt.s32.totalorder %s1345_s29, 2 }
  0x15   : > { %s1716_s14 = scalar_select %p1454_p9, 1, 0 }
  0x16   : > { %p1460_p12 = pnand %p964_p10, %p231_p11  ;;  %s256_s17 = sshll.u32 %s1347_s16, 4  ;;  %s1464_s17 = int_to_ptr.vmem [resolvable:$true] %s256_s17 }
  0x17   : > { %1717 = sst [smem:[#allocation13_spill]] %s1716_s14  ;;  %p1478_p4 = pnand %p1101_p1, %p1440_p5 }
  0x18   : > { %s1718_s15 = scalar_select %p1460_p12, 1, 0 }
  0x19   : > { %p1088_p13 = pneg %p1460_p12  ;;  %s33_s20 = sadd.s32 1, %s1341_s28 }
  0x1a   : > { %s1720_s19 = scalar_select %p1478_p4, 1, 0 }
  0x1b   : > { %p1472_p2 = pnand %p1088_p13, %p1436_p3  ;;  %p1483_p6 = scmp.ge.s32.totalorder %s33_s20, 2 }
  0x1c   : > { %s1201_s30 = scalar_lea.hbm %s1693_s3, 1024 }
  0x1d   : > { %s1721_s21 = scalar_select %p1483_p6, 1, 0 }
  0x1e   : > { %p1202_p10 = scmp.ne.s32.totalorder %s1693_s3, %s1201_s30  ;;  %p1203_p11 = pneg %p1472_p2 }
  0x1f   : > { %p1208_p1 = scmp.lt.u32.totalorder %s1201_s30, %s1693_s3 }
  0x20   : > { %p1204_p13 = pnand %p1203_p11, %p1202_p10 }
  0x22   : > { %p1205_p5 = pneg %p1204_p13 }
  0x24   : > { %p1210_p0 = pnand %p1208_p1, %p1205_p5 }
  0x26   : > { %1213 = shalt.err (!%p1210_p0)
}
  0x27   : > { %s1214_s29 = scalar_lea.vmem %s1464_s17, 1024  ;;  %p1222_p3 = scmp.lt.s32.totalorder %s1464_s17, %s1464_s17 }
  0x28   : > { %p1215_p9 = scmp.ne.s32.totalorder %s1464_s17, %s1214_s29  ;;  %p1223_p12 = scmp.lt.s32.totalorder %s1214_s29, %s1214_s29 }
  0x2a   : > { %p1217_p8 = pnand %p1215_p9, %p1203_p11  ;;  %p1224_p4 = por %p1223_p12, %p1222_p3 }
  0x2c   : > { %p1218_p7 = pneg %p1217_p8 }
  0x2e   : > { %p1225_p6 = pnand %p1224_p4, %p1218_p7 }
  0x30   : > { %1228 = shalt.err (!%p1225_p6)
}
  0x31   : > { %s1348_s22 = smov 64   ;;  %s1349_s9 = smov 4  }
  0x32   : > { %1091 = dma.hbm_to_vmem [thread:$0]  (!%p1472_p2), %s1693_s3, 1024, %s1464_s17, [#allocation3], %s1348_s22, %s1348_s22, %s1349_s9  }
  0x33   : > { %s273_s29 = sand.u32 1, %s1333_s26   ;;  %p1722_p3 = scmp.ne.s32.totalorder %s1721_s21, 0 }
  0x34   : > { %s1077_s8 = smul.u32 192, %s273_s29  ;;  %s1723_s22 = sadd.s32 1, %s1333_s26 }
  0x35   : > { %s1741_s20 = smov (%p1722_p3, %s33_s20), 0  ;;  %s1010_s11 = smul.u32 192, %s1341_s28 }
  0x36   : > { %s150_s16 = ssub.s32 %s1341_s28, %s1741_s20  ;;  %s277_s17 = scalar_lea.vmem [#allocation5], %s1077_s8 }
  0x37   : > { %p151_p7 = scmp.eq.s32.totalorder %s150_s16, 0  ;;  %s1519_s7 = scalar_lea.hbm %s1695_s5, %s1010_s11 }
  0x38   : > { %s284_s18 = sshll.u32 %s277_s17, 4  ;;  %s1528_s9 = scalar_lea.sflag [#allocation6], %s273_s29  ;;  %s1526_s18 = int_to_ptr.vmem [resolvable:$true] %s284_s18 }
  0x39   : > { %s1524_s21 = scalar_select %p151_p7, %s1333_s26, %s1723_s22  }
  0x3a   : > { %s1229_s23 = scalar_lea.hbm %s1519_s7, 3072  ;;  %p1724_p9 = scmp.ne.s32.totalorder %s1720_s19, 0 }
  0x3b   : > { %p1230_p8 = scmp.ne.s32.totalorder %s1519_s7, %s1229_s23  ;;  %s1234_s30 = scalar_lea.hbm %s1695_s5, 6144 }
  0x3c   : > { %p1231_p12 = pneg %p1724_p9  ;;  %p1235_p4 = scmp.lt.u32.totalorder %s1519_s7, %s1695_s5 }
  0x3d   : > { %p1236_p6 = scmp.lt.u32.totalorder %s1234_s30, %s1229_s23  ;;  %p1238_p11 = scmp.lt.u32.totalorder %s1229_s23, %s1519_s7 }
  0x3e   : > { %p1232_p0 = pnand %p1231_p12, %p1230_p8 }
  0x3f   : > { %p1237_p10 = por %p1236_p6, %p1235_p4 }
  0x40   : > { %p1233_p2 = pneg %p1232_p0 }
  0x41   : > { %p1239_p13 = por %p1238_p11, %p1237_p10 }
  0x43   : > { %p1240_p5 = pnand %p1239_p13, %p1233_p2 }
  0x45   : > { %1243 = shalt.err (!%p1240_p5)
}
  0x46   : > { %s1244_s29 = scalar_lea.vmem %s1526_s18, 3072  ;;  %s1350_s11 = smov [#allocation5]  }
  0x47   : > { %p1245_p1 = scmp.ne.s32.totalorder %s1526_s18, %s1244_s29  ;;  %s1249_s17 = sshll.u32 %s1350_s11, 4  ;;  %s1250_s17 = int_to_ptr.vmem [resolvable:$false] %s1249_s17 }
  0x48   : > { %s1251_s22 = scalar_lea.vmem %s1250_s17, 6144  ;;  %p1252_p8 = scmp.lt.s32.totalorder %s1526_s18, %s1250_s17 }
  0x49   : > { %p1247_p3 = pnand %p1245_p1, %p1231_p12  ;;  %p1253_p0 = scmp.lt.s32.totalorder %s1251_s22, %s1244_s29 }
  0x4b   : > { %p1248_p7 = pneg %p1247_p3  ;;  %p1254_p4 = por %p1253_p0, %p1252_p8 }
  0x4d   : > { %p1255_p6 = pnand %p1254_p4, %p1248_p7 }
  0x4f   : > { %1258 = shalt.err (!%p1255_p6)
}
  0x50   : > { %s1351_s23 = smov 384   ;;  %s1352_s24 = smov 192  }
  0x51   : > { %s1353_s14 = smov 12   ;;  %p1725_p12 = scmp.ne.s32.totalorder %s1718_s15, 0 }
  0x52   : > { %1095 = dma.hbm_to_vmem [thread:$0]  (!%p1724_p9), %s1519_s7, 3072, %s1526_s18, %s1528_s9, %s1351_s23, %s1352_s24, %s1353_s14  }
  0x53   : > { %304 = sbr.rel (%p1725_p12) target bundleno = 765 (0x2fd), region = 48  ;;  %p1726_p2 = scmp.ne.s32.totalorder (!%p1725_p12), %s1712_s10, 0 }
  0x5a   : > { %1312 = dma.done.wait (%p1726_p2), [#allocation3], 1024  }
  0x5b   : > { %1314 = vsyncadd (%p1726_p2), [#allocation3], 4294966272  ;;  %s1563_s30 = sand.u32 1, %s1329_s25   ;;  %p1727_p9 = scmp.ne.s32.totalorder %s1714_s12, 0 }
  0x5c   : > { %s1078_s8 = smul.u32 192, %s1563_s30  ;;  %s311_s16 = scalar_lea.sflag [#allocation6], %s1563_s30 }
  0x5e   : > { %s1567_s29 = scalar_lea.vmem [#allocation5], %s1078_s8 }
  0x5f   : > { %1316 = dma.done.wait (%p1727_p9), %s311_s16, 3072  }
  0x60   : > { %1318 = vsyncadd (%p1727_p9), %s311_s16, 4294964224  ;;  %v1354_v0 = vmov 0.0   ;;  %vm1355_vm0 = vmmov 0   ;;  %vm378_vm1 = vcmask 1043456   ;;  %vm374_vm2 = vcmask 31744   ;;  %v365_v2 = vld [vmem:[%s1690_s0] sm:$0xff] }
  0x61   : > { %1032 = vmatprep.subr.mxu0 %v1354_v0  ;;  %1034 = vmatprep.mubr.msk.f32.mxu0 %vm1355_vm0, %v1354_v0  ;;  %v366_v1 = vld [vmem:[%s1691_s1] sm:$0xf]  ;;  %v1162_v4 = vld [vmem:[#allocation2 + $0x8] sm:$0xff]   ;;  %v1163_v5 = vld [vmem:[#allocation2 + $0x10] sm:$0xff]   ;;  %v1356_v41 = vmov 0   ;;  %s358_s17 = smul.u32 3, %s1337_s27  ;;  %v601_v50 = vlaneseq }
  0x62   : > { %1037 = vmatprep.subr.bf16.mxu1 %v1354_v0  ;;  %1053 = vmatprep.mubr.msk.bf16.mxu1 %vm1355_vm0, %v1354_v0  ;;  %v1161_v3 = vld [vmem:[#allocation2] sm:$0xff]   ;;  %v1164_v6 = vld [vmem:[#allocation2 + $0x18] sm:$0xff]   ;;  %v1166_v8 = vld [vmem:[#allocation2 + $0x28] sm:$0xff]   ;;  %s1079_s14 = smul.u32 24, %s1563_s30  ;;  %s1728_s12 = sld [smem:[#allocation14_spill]] }
  0x63   : > { %1033 = vmatpush3.msk.msra.mxu0 %vm378_vm1, %v366_v1  ;;  %1038 = vmatpush3.bf16.msra.mxu1 %v1161_v3  ;;  %v1165_v7 = vld [vmem:[#allocation2 + $0x20] sm:$0xff]   ;;  %v1167_v9 = vld [vmem:[#allocation2 + $0x30] sm:$0xff]   ;;  %v1168_v10 = vld [vmem:[#allocation2 + $0x38] sm:$0xff]   ;;  %p359_p10 = scmp.lt.s32.totalorder %s358_s17, 5  ;;  %v602_v51 = vshrl.u32 %v601_v50, 7  ;;  %s1011_s8 = smul.u32 384, %s1337_s27 }
  0x64   : > { %1035 = vmatmul.mubr.msk.f32.vlgmr.msra.gmra.mrb[0].mxu0 %vm374_vm2, %v365_v2  ;;  %1039 = vmatprep.subr.bf16.mxu1 %v1354_v0  ;;  %v1169_v11 = vld [vmem:[%s1567_s29] ss:$12 sps:$4 sm:$0xff]   ;;  %v1171_v12 = vld [vmem:[%s1567_s29 + $0x4] ss:$12 sps:$4 sm:$0xff]   ;;  %v1175_v13 = vld [vmem:[%s1567_s29 + $0x1c] ss:$12 sps:$4 sm:$0xff]  }
  0x65   : > { %744 = vmatprep.subr.bf16.mxu0 %v1171_v12  ;;  %v1173_v14 = vld [vmem:[%s1567_s29 + $0x18] ss:$12 sps:$4 sm:$0xff]   ;;  %v1179_v15 = vld [vmem:[%s1567_s29 + $0x34] ss:$12 sps:$4 sm:$0xff]   ;;  %v1177_v16 = vld [vmem:[%s1567_s29 + $0x30] ss:$12 sps:$4 sm:$0xff]   ;;  %776 = vmatprep.mubr.bf16.mxu0 %v1356_v41 }
  0x66   : > { %745 = vmatpush1.bf16.msra.mxu0 %v1169_v11  ;;  %v1183_v17 = vld [vmem:[%s1567_s29 + $0x4c] ss:$12 sps:$4 sm:$0xff]   ;;  %v1181_v18 = vld [vmem:[%s1567_s29 + $0x48] ss:$12 sps:$4 sm:$0xff]   ;;  %v1187_v19 = vld [vmem:[%s1567_s29 + $0x64] ss:$12 sps:$4 sm:$0xff]  }
  0x67   : > { %1040 = vmatpush3.bf16.msra.mxu1 %v1162_v4  ;;  %746 = vmatprep.subr.bf16.mxu0 %v1175_v13  ;;  %v1185_v20 = vld [vmem:[%s1567_s29 + $0x60] ss:$12 sps:$4 sm:$0xff]   ;;  %v1191_v21 = vld [vmem:[%s1567_s29 + $0x7c] ss:$12 sps:$4 sm:$0xff]   ;;  %v1189_v22 = vld [vmem:[%s1567_s29 + $0x78] ss:$12 sps:$4 sm:$0xff]  }
  0x68   : > { %1041 = vmatprep.subr.bf16.mxu1 %v1354_v0  ;;  %v1195_v23 = vld [vmem:[%s1567_s29 + $0x94] ss:$12 sps:$4 sm:$0xff]   ;;  %v1193_v24 = vld [vmem:[%s1567_s29 + $0x90] ss:$12 sps:$4 sm:$0xff]   ;;  %v1180_v33 = vld [vmem:[%s1567_s29 + $0x38] ss:$12 sps:$4 sm:$0xff]   ;;  %s1641_s15 = scalar_lea.hbm %s1728_s12, %s1011_s8 }
  0x69   : > { %v971_v25 = vld [vmem:[%s1692_s2] ss:$0 sm:$0xff]  ;;  %v1172_v30 = vld [vmem:[%s1567_s29 + $0x8] ss:$12 sps:$4 sm:$0xff]   ;;  %v1184_v34 = vld [vmem:[%s1567_s29 + $0x50] ss:$12 sps:$4 sm:$0xff]  }
  0x6a   : > { %747 = vmatpush1.bf16.msra.mxu0 %v1173_v14  ;;  %v1176_v32 = vld [vmem:[%s1567_s29 + $0x20] ss:$12 sps:$4 sm:$0xff]   ;;  %v1188_v35 = vld [vmem:[%s1567_s29 + $0x68] ss:$12 sps:$4 sm:$0xff]   ;;  %v1196_v37 = vld [vmem:[%s1567_s29 + $0x98] ss:$12 sps:$4 sm:$0xff]  }
  0x6b   : > { %1042 = vmatpush3.bf16.msra.mxu1 %v1163_v5  ;;  %748 = vmatprep.subr.bf16.mxu0 %v1179_v15  ;;  %v1192_v36 = vld [vmem:[%s1567_s29 + $0x80] ss:$12 sps:$4 sm:$0xff]   ;;  %v1197_v39 = vld [vmem:[%s1567_s29 + $0xa8] ss:$12 sps:$4 sm:$0xff]   ;;  %v1200_v40 = vld [vmem:[%s1567_s29 + $0xb0] ss:$12 sps:$4 sm:$0xff]  }
  0x6c   : > { %1043 = vmatprep.subr.bf16.mxu1 %v1354_v0  ;;  %v1199_v38 = vld [vmem:[%s1567_s29 + $0xac] ss:$12 sps:$4 sm:$0xff]   ;;  %v974_v42 = vld [vmem:[%s1694_s4] ss:$0 sm:$0xff]  ;;  %s1743_s17 = smov (!%p359_p10, %s358_s17), 5  ;;  %v603_v52 = vsub.s32 0, %v602_v51 }
  0x6d   : > { %s361_s24 = scalar_lea.vmem %s1696_s6, %s1743_s17  ;;  %v611_v53 = vsub.s32 2, %v602_v51  ;;  %v607_v55 = vsub.s32 1, %v602_v51  ;;  %s352_s16 = scalar_lea.vmem [#allocation7], %s1079_s14 }
  0x6e   : > { %749 = vmatpush1.bf16.msra.mxu0 %v1177_v16  ;;  %v599_v54 = vld [vmem:[%s361_s24] sm:$0x7]  ;;  %s845_s29 = sshll.u32 %s352_s16, 4  ;;  %s829_s27 = scalar_lea.sflag [#allocation4], %s1563_s30  ;;  %s1643_s29 = int_to_ptr.vmem [resolvable:$true] %s845_s29 }
  0x6f   : > { %1044 = vmatpush3.bf16.msra.mxu1 %v1164_v6  ;;  %750 = vmatprep.subr.bf16.mxu0 %v1183_v17  ;;  %v604_v56 = vrot.slane %v599_v54, %v603_v52  ;;  %v612_v57 = vrot.slane %v599_v54, %v611_v53  ;;  %v608_v58 = vrot.slane %v599_v54, %v607_v55  ;;  %s1259_s19 = scalar_lea.vmem %s1643_s29, 384  ;;  %p1729_p13 = scmp.ne.s32.totalorder %s1715_s13, 0 }
  0x70   : > { %1045 = vmatprep.subr.bf16.mxu1 %v1354_v0  ;;  %p1260_p11 = scmp.ne.s32.totalorder %s1643_s29, %s1259_s19  ;;  %s1357_s18 = smov [#allocation7]  }
  0x71   : > { %s1263_s9 = sshll.u32 %s1357_s18, 4  ;;  %s1264_s9 = int_to_ptr.vmem [resolvable:$false] %s1263_s9 }
  0x72   : > { %751 = vmatpush1.bf16.msra.mxu0 %v1181_v18  ;;  %p1261_p5 = pnand %p1260_p11, %p1729_p13  ;;  %s1265_s11 = scalar_lea.vmem %s1264_s9, 768 }
  0x73   : > { %1046 = vmatpush3.bf16.msra.mxu1 %v1165_v7  ;;  %752 = vmatprep.subr.bf16.mxu0 %v1187_v19  ;;  %p1266_p3 = scmp.lt.s32.totalorder %s1643_s29, %s1264_s9  ;;  %p1267_p7 = scmp.lt.s32.totalorder %s1265_s11, %s1259_s19 }
  0x74   : > { %1047 = vmatprep.subr.bf16.mxu1 %v1354_v0  ;;  %p1262_p1 = pneg %p1261_p5 }
  0x75   : > { %p1268_p8 = por %p1267_p7, %p1266_p3 }
  0x76   : > { %753 = vmatpush1.bf16.msra.mxu0 %v1185_v20 }
  0x77   : > { %1048 = vmatpush3.bf16.msra.mxu1 %v1166_v8  ;;  %754 = vmatprep.subr.bf16.mxu0 %v1191_v21  ;;  %p1269_p0 = pnand %p1268_p8, %p1262_p1 }
  0x78   : > { %1049 = vmatprep.subr.bf16.mxu1 %v1354_v0 }
  0x7a   : > { %755 = vmatpush1.bf16.msra.mxu0 %v1189_v22 }
  0x7b   : > { %1050 = vmatpush3.bf16.msra.mxu1 %v1167_v9  ;;  %756 = vmatprep.subr.bf16.mxu0 %v1195_v23 }
  0x7c   : > { %1051 = vmatprep.subr.bf16.mxu1 %v1354_v0 }
  0x7e   : > { %757 = vmatpush1.bf16.msra.mxu0 %v1193_v24 }
  0x7f   : > { %1052 = vmatpush3.bf16.msra.mxu1 %v1168_v10  ;;  %758 = vmatprep.subr.bf16.mxu0 %v1199_v38 }
  0x80   : > { %1057 = vmatprep.subr.bf16.mxu1 %v1354_v0 }
  0x82   : > { %759 = vmatpush1.bf16.msra.mxu0 %v1197_v39 }
 0x137   : > { %v448_v26 = vpop.f32.mrb[0].mxu0 }
 0x138   : > { %v449_v27 = vadd.f32 %v971_v25, %v448_v26  ;;  %v1036_v28 = vpop.f32.mrb[1].mxu0 }
 0x13a   : > { %v452_v29 = vmax.f32 %v449_v27, 0.0 }
 0x13c   : > { %v453_v31 = vpack.c.bf16 %v452_v29, %v452_v29 }
 0x13e   : > { %1054 = vmatmul.mubr.bf16.vlgmr.msra.gmra.mrb[0].mxu1 %v453_v31 }
 0x13f   : > { %1058 = vmatpush3.bf16.msra.mxu1 %v1172_v30  ;;  %1073 = vmatprep.mubr.msk.bf16.mxu1 %vm1355_vm0, %v1354_v0 }
 0x140   : > { %1059 = vmatprep.subr.bf16.mxu1 %v1354_v0 }
 0x143   : > { %1060 = vmatpush3.bf16.msra.mxu1 %v1176_v32 }
 0x144   : > { %1061 = vmatprep.subr.bf16.mxu1 %v1354_v0 }
 0x147   : > { %1062 = vmatpush3.bf16.msra.mxu1 %v1180_v33 }
 0x148   : > { %1063 = vmatprep.subr.bf16.mxu1 %v1354_v0 }
 0x14b   : > { %1064 = vmatpush3.bf16.msra.mxu1 %v1184_v34 }
 0x14c   : > { %1065 = vmatprep.subr.bf16.mxu1 %v1354_v0 }
 0x14f   : > { %1066 = vmatpush3.bf16.msra.mxu1 %v1188_v35 }
 0x150   : > { %1067 = vmatprep.subr.bf16.mxu1 %v1354_v0 }
 0x153   : > { %1068 = vmatpush3.bf16.msra.mxu1 %v1192_v36 }
 0x154   : > { %1069 = vmatprep.subr.bf16.mxu1 %v1354_v0 }
 0x157   : > { %1070 = vmatpush3.bf16.msra.mxu1 %v1196_v37 }
 0x158   : > { %1071 = vmatprep.subr.bf16.mxu1 %v1354_v0 }
 0x15b   : > { %1072 = vmatpush3.bf16.msra.mxu1 %v1200_v40 }
 0x211   : > { %v559_v43 = vpop.f32.mrb[0].mxu1 }
 0x212   : > { %v560_v44 = vadd.f32 %v974_v42, %v559_v43  ;;  %v1055_v45 = vpop.f32.mrb[1].mxu1 }
 0x213   : > { %v562_v46 = vpop.f32.mrb[2].mxu1 }
 0x214   : > { %v565_v47 = vmax.f32 %v560_v44, 0.0  ;;  %v1056_v48 = vpop.f32.mrb[3].mxu1 }
 0x216   : > { %v566_v49 = vpack.c.bf16 %v565_v47, %v565_v47 }
 0x218   : > { %777 = vmatmul.mubr.bf16.vlgmr.msra.gmra.mrb[4].mxu0 %v566_v49  ;;  %1074 = vmatmul.mubr.bf16.vlgmr.msra.gmra.mrb[4].mxu1 %v566_v49 }
 0x2eb   : > { %v778_v59 = vpop.f32.mrb[4].mxu0  ;;  %v819_v60 = vpop.f32.mrb[4].mxu1 }
 0x2ec   : > { %v779_v61 = vadd.f32 %v778_v59, %v604_v56  ;;  %v820_v62 = vadd.f32 %v819_v60, %v612_v57  ;;  %v780_v63 = vpop.f32.mrb[5].mxu0  ;;  %v1075_v0 = vpop.f32.mrb[5].mxu1 }
 0x2ed   : > { %v781_v1 = vadd.f32 %v780_v63, %v608_v58  ;;  %v782_v2 = vpop.f32.mrb[6].mxu0  ;;  %v822_v3 = vpop.f32.mrb[6].mxu1 }
 0x2ee   : > { %825 = vst [vmem:[%s352_s16] sm:$0xff] %v779_v61  ;;  %827 = vst [vmem:[%s352_s16 + $0x10] sm:$0xff] %v820_v62  ;;  %v783_v4 = vpop.f32.mrb[7].mxu0  ;;  %v1076_v5 = vpop.f32.mrb[7].mxu1 }
 0x2ef   : > { %826 = vst [vmem:[%s352_s16 + $0x8] sm:$0xff] %v781_v1 }
 0x2f0   : > { %1272 = shalt.err (!%p1269_p0)
}
 0x2f1   : > { %s1273_s30 = scalar_lea.hbm %s1641_s15, 384  ;;  %s1277_s23 = scalar_lea.hbm %s1728_s12, 768 }
 0x2f2   : > { %p1274_p4 = scmp.ne.s32.totalorder %s1641_s15, %s1273_s30  ;;  %p1278_p2 = scmp.lt.u32.totalorder %s1641_s15, %s1728_s12 }
 0x2f3   : > { %p1279_p9 = scmp.lt.u32.totalorder %s1277_s23, %s1273_s30  ;;  %p1281_p11 = scmp.lt.u32.totalorder %s1273_s30, %s1641_s15 }
 0x2f4   : > { %p1275_p6 = pnand %p1274_p4, %p1729_p13 }
 0x2f5   : > { %p1280_p10 = por %p1279_p9, %p1278_p2 }
 0x2f6   : > { %p1276_p12 = pneg %p1275_p6 }
 0x2f7   : > { %p1282_p5 = por %p1281_p11, %p1280_p10 }
 0x2f9   : > { %p1283_p1 = pnand %p1282_p5, %p1276_p12 }
 0x2fb   : > { %1286 = shalt.err (!%p1283_p1)
}
 0x2fc   : > { %1086 = dma.vmem_to_hbm [thread:$0]  (%p1729_p13), %s1643_s29, 384, %s1641_s15, %s829_s27  }
 0x2fd PF: > { %s1730_s8 = sld [smem:[#allocation11_spill]]  ;;  %s1731_s16 = sld [smem:[#allocation13_spill]] }
 0x2fe   : > { %s1732_s7 = sld [smem:[#allocation12_spill]] }
 0x303   : > { %s857_s10 = sand.u32 1, %s1730_s8   ;;  %p1733_p3 = scmp.ne.s32.totalorder %s1731_s16, 0 }
 0x304   : > { %p1734_p7 = scmp.ge.s32.totalorder %s1732_s7, 2  ;;  %s858_s19 = scalar_lea.sflag [#allocation4], %s857_s10 }
 0x306   : > { %p1097_p8 = pnand %p1734_p7, %p1733_p3 }
 0x308   : > { %1320 = dma.done.wait (!%p1097_p8), %s858_s19, 384  }
 0x309   : > { %1322 = vsyncadd (!%p1097_p8), %s858_s19, 4294966912  ;;  %s24_s29 = sadd.s32 1, %s1732_s7   ;;  %s1735_s24 = smov %s1329_s25 }
 0x30a   : > { %p21_p0 = scmp.ge.s32.totalorder %s24_s29, 4   ;;  %s1736_s25 = smov %s1333_s26 }
 0x30b   : > { %s1737_s26 = smov %s1524_s21  ;;  %s1738_s27 = smov %s1341_s28 }
 0x30c   : > { %s1739_s28 = smov %s1741_s20  ;;  %23 = sbr.rel (!%p21_p0) target bundleno = 9 (0x9), region = 104 }
 0x313   :  { %863 = vsyncpa [#allocation3], 1 }
 0x314   :  { %865 = vsyncpa [#allocation3 + $0x1], 1 }
 0x315   :  { %866 = vsyncpa [#allocation6], 1 }
 0x316   :  { %868 = vsyncpa [#allocation6 + $0x1], 1 }
 0x317   :  { %869 = vsyncpa [#allocation4], 1 }
 0x318   :  { %871 = vsyncpa [#allocation4 + $0x1], 1 }

</bundles_post_ra>
